<compile_context>
chip_gen: v5e
topology: v5e:2x2
jax: 0.10.0
libtpu: 0.0.40
codegen_flags: <defaults>
</compile_context>

<pallas_src>
import jax
import jax.numpy as jnp
from jax import lax
from jax.experimental import pallas as pl
from jax.experimental.pallas import tpu as pltpu

LN_EPS = 1e-12  # BERT LayerNorm epsilon


def _layer_norm(x, gamma, beta):
    mean = jnp.mean(x, axis=-1, keepdims=True)
    var = jnp.mean(jnp.square(x - mean), axis=-1, keepdims=True)
    return (x - mean) * lax.rsqrt(var + LN_EPS) * gamma + beta


# ----------------------------------------------------------------------------
# Embedding kernels
# ----------------------------------------------------------------------------
def _embed_ids_kernel(ids_ref, wemb_ref, extra_ref, g_ref, b_ref, o_ref):
    # ids_ref: (N, 1) int32; wemb_ref: (V, H); extra_ref: (N, H) = pos + token_type;
    # One-hot MXU gather (exact in f32: one 1.0 per row, rest zeros).
    n = ids_ref.shape[0]
    v = wemb_ref.shape[0]
    one_hot = (lax.broadcasted_iota(jnp.int32, (n, v), 1)
               == ids_ref[...]).astype(jnp.float32)
    word = jnp.dot(one_hot, wemb_ref[...], preferred_element_type=jnp.float32)
    x = word + extra_ref[...]
    o_ref[...] = _layer_norm(x, g_ref[...], b_ref[...])


def _embed_dense_kernel(e_ref, extra_ref, g_ref, b_ref, o_ref):
    # inputs_embeds path: add position/type rows + LayerNorm.
    x = e_ref[...] + extra_ref[...]
    o_ref[...] = _layer_norm(x, g_ref[...], b_ref[...])


def _embed(params, *, input_ids=None, inputs_embeds=None):
    if inputs_embeds is not None:
        B, S, H = inputs_embeds.shape
    else:
        B, S = input_ids.shape
        H = params["word_emb"].shape[1]
    N = B * S
    # Constant per-position additive term (position + token_type-0), tiled over batch.
    extra = jnp.tile(params["pos_emb"][:S] + params["type_emb"][0:1], (B, 1))  # (N, H)
    full2 = lambda: (0, 0)
    out_shape = jax.ShapeDtypeStruct((N, H), jnp.float32)
    out_spec = pl.BlockSpec((N, H), full2)

    if inputs_embeds is not None:
        x = pl.pallas_call(
            _embed_dense_kernel,
            out_shape=out_shape,
            in_specs=[pl.BlockSpec((N, H), full2),
                      pl.BlockSpec((N, H), full2),
                      pl.BlockSpec((1, H), full2),
                      pl.BlockSpec((1, H), full2)],
            out_specs=out_spec,
        )(inputs_embeds.reshape(N, H).astype(jnp.float32), extra,
          params["emb_ln_g"], params["emb_ln_b"])
    else:
        V = params["word_emb"].shape[0]
        # TODO(synk): at production vocab sizes (30K x 768) keep word_emb in HBM
        # (memory_space=pl.ANY) and use a double-buffered DMA row gather / vocab-tiled
        # one-hot matmul instead of a VMEM-resident table (v7x has only 64 MiB VMEM).
        x = pl.pallas_call(
            _embed_ids_kernel,
            out_shape=out_shape,
            in_specs=[pl.BlockSpec((N, 1), full2),
                      pl.BlockSpec((V, H), full2),
                      pl.BlockSpec((N, H), full2),
                      pl.BlockSpec((1, H), full2),
                      pl.BlockSpec((1, H), full2)],
            out_specs=out_spec,
        )(input_ids.reshape(N, 1).astype(jnp.int32), params["word_emb"], extra,
          params["emb_ln_g"], params["emb_ln_b"])
    return x, B, S, H, N


# ----------------------------------------------------------------------------
# Fused encoder stack: one pallas_call over all layers (grid = (L,))
# ----------------------------------------------------------------------------
def _make_stack_kernel(num_heads, num_layers, batch, seq):
    def kernel(x0_ref, bias_ref,
               wqkv_t_ref, bqkv_t_ref, wo_ref, bo_ref, ln1g_ref, ln1b_ref,
               w1_ref, b1_ref, w2_ref, b2_ref, ln2g_ref, ln2b_ref,
               wp_ref, bp_ref,
               hid_ref, pooled_ref):
        l = pl.program_id(0)
        N, H = hid_ref.shape
        hd = H // num_heads
        scale = float(hd) ** -0.5

        # Hidden state is the output block (constant index_map -> VMEM-resident across
        # all layers); initialize it from the embeddings at layer 0.
        @pl.when(l == 0)
        def _():
            hid_ref[...] = x0_ref[...]

        x = hid_ref[...]                      # (N, H) f32
        xb = x.astype(jnp.bfloat16)           # bf16 MXU inputs, f32 accumulation

        # ---- Multi-head self-attention (heads on a major axis; no lane slicing) ----
        # QKV in "transposed" space: qkv_t[f, t] = sum_h wqkv[h, f] * x[t, h].
        qkv_t = lax.dot_general(wqkv_t_ref[0], xb, (((1,), (1,)), ((), ())),
                                preferred_element_type=jnp.float32) + bqkv_t_ref[0]
        # Sublane-range slices + major-only reshapes (free): (H, N) -> (nh, hd, N).
        q_t = qkv_t[0 * H:1 * H].reshape(num_heads, hd, N).astype(jnp.bfloat16)
        k_t = qkv_t[1 * H:2 * H].reshape(num_heads, hd, N).astype(jnp.bfloat16)
        v_t = qkv_t[2 * H:3 * H].reshape(num_heads, hd, N).astype(jnp.bfloat16)

        # Scores for all heads in one batched MXU op: (nh, Nq, Nk).
        s = jnp.einsum("hdq,hdk->hqk", q_t, k_t,
                       preferred_element_type=jnp.float32) * scale
        s = s + bias_ref[...][None, :, :]     # block-diagonal + key-padding mask
        m = jnp.max(s, axis=-1, keepdims=True)
        p = jnp.exp(s - m)
        p = p * pl.reciprocal(jnp.sum(p, axis=-1, keepdims=True), approx=True)

        # Context, head-major transposed: (nh, hd, Nq) -> merge to (H, N).
        ctx_t = jnp.einsum("hdk,hqk->hdq", v_t, p.astype(jnp.bfloat16),
                           preferred_element_type=jnp.float32)
        ctx_t = ctx_t.reshape(H, N).astype(jnp.bfloat16)

        # Output projection back to token-major: attn = ctx @ W_o  (== ctx_t^T @ W_o).
        attn = lax.dot_general(ctx_t, wo_ref[0], (((0,), (0,)), ((), ())),
                               preferred_element_type=jnp.float32) + bo_ref[0]
        x1 = _layer_norm(x + attn, ln1g_ref[0], ln1b_ref[0])     # f32 elementwise

        # ---- GELU FFN ----
        h1 = jnp.dot(x1.astype(jnp.bfloat16), w1_ref[0],
                     preferred_element_type=jnp.float32) + b1_ref[0]
        h1 = jax.nn.gelu(h1, approximate=True)
        ffn = jnp.dot(h1.astype(jnp.bfloat16), w2_ref[0],
                      preferred_element_type=jnp.float32) + b2_ref[0]
        out = _layer_norm(x1 + ffn, ln2g_ref[0], ln2b_ref[0])

        hid_ref[...] = out

        # ---- tanh pooler: only for the last layer (weights DMA'd once) ----
        @pl.when(l == num_layers - 1)
        def _():
            cls = out.reshape(batch, seq, H)[:, 0, :].astype(jnp.bfloat16)   # (B, H)
            pooled = jnp.tanh(jnp.dot(cls, wp_ref[...],
                                      preferred_element_type=jnp.float32) + bp_ref[...])
            pooled_ref[...] = pooled

    return kernel


def _run_encoder_stack(params, x, bias, B, S, H, N, num_heads):
    layers = params["layers"]
    L = len(layers)
    I = layers[0]["w1"].shape[1]
    bf = jnp.bfloat16

    # Stack per-layer weights along a leading layer axis so BlockSpec pipelines the
    # next layer's weight DMA behind the current layer's compute.  Matmul weights are
    # stored bf16; biases / LayerNorm params stay f32.
    # TODO(synk): in a real model these stacks would be materialized once at load time.
    stack = lambda name, f: jnp.stack([f(lp[name]) for lp in layers])
    wqkv_t = stack("wqkv", lambda w: w.T.astype(bf))     # (L, 3H, H)
    bqkv_t = stack("bqkv", lambda b: b.T)                # (L, 3H, 1)
    wo = stack("wo", lambda w: w.astype(bf))             # (L, H, H)
    bo = stack("bo", lambda b: b)                        # (L, 1, H)
    ln1g = stack("ln1_g", lambda b: b)
    ln1b = stack("ln1_b", lambda b: b)
    w1 = stack("w1", lambda w: w.astype(bf))             # (L, H, I)
    b1 = stack("b1", lambda b: b)
    w2 = stack("w2", lambda w: w.astype(bf))             # (L, I, H)
    b2 = stack("b2", lambda b: b)
    ln2g = stack("ln2_g", lambda b: b)
    ln2b = stack("ln2_b", lambda b: b)
    wp = params["wp"].astype(bf)
    bp = params["bp"]

    c2 = lambda l: (0, 0)
    lw = lambda l: (l, 0, 0)
    spec3 = lambda a: pl.BlockSpec((1,) + a.shape[1:], lw)

    in_specs = [
        pl.BlockSpec((N, H), c2),             # x0 (embeddings)
        pl.BlockSpec((N, N), c2),             # additive attention bias
        spec3(wqkv_t), spec3(bqkv_t), spec3(wo), spec3(bo),
        spec3(ln1g), spec3(ln1b),
        spec3(w1), spec3(b1), spec3(w2), spec3(b2),
        spec3(ln2g), spec3(ln2b),
        pl.BlockSpec((H, H), c2),             # pooler weight (resident, used at l==L-1)
        pl.BlockSpec((1, H), c2),             # pooler bias
    ]
    out_specs = (pl.BlockSpec((N, H), c2),    # hidden: VMEM-resident accumulator
                 pl.BlockSpec((B, H), c2))    # pooled: written only at last layer
    out_shape = (jax.ShapeDtypeStruct((N, H), jnp.float32),
                 jax.ShapeDtypeStruct((B, H), jnp.float32))

    args = (x, bias, wqkv_t, bqkv_t, wo, bo, ln1g, ln1b,
            w1, b1, w2, b2, ln2g, ln2b, wp, bp)

    hd = H // num_heads
    flops = L * (2 * N * H * 3 * H + 4 * num_heads * N * N * hd
                 + 2 * N * H * H + 4 * N * H * I) + 2 * B * H * H
    transc = L * (num_heads * N * N + N * I) + B * H
    bytes_acc = (sum(int(a.size) * a.dtype.itemsize for a in args)
                 + N * H * 4 + B * H * 4)

    # NOTE: at this toy size everything fits the default VMEM limit; for real sizes
    # (and v7x's 64 MiB VMEM) set vmem_limit_bytes explicitly and keep weights bf16.
    hidden, pooled = pl.pallas_call(
        _make_stack_kernel(num_heads, L, B, S),
        grid=(L,),
        in_specs=in_specs,
        out_specs=out_specs,
        out_shape=out_shape,
        compiler_params=pltpu.CompilerParams(
            dimension_semantics=("arbitrary",)),   # layers are strictly sequential
        cost_estimate=pl.CostEstimate(flops=flops, transcendentals=transc,
                                      bytes_accessed=bytes_acc),
    )(*args)
    return hidden.reshape(B, S, H), pooled


# ----------------------------------------------------------------------------
# BaseEncoder.forward equivalent
# ----------------------------------------------------------------------------
def base_encoder_forward(params, input_ids=None, attention_mask=None,
                         inputs_embeds=None, num_heads=4):
    """Returns (last_hidden_state, pooler_output), mirroring the HF model output."""
    x, B, S, H, N = _embed(params, input_ids=input_ids, inputs_embeds=inputs_embeds)
    if inputs_embeds is not None:
        # Spec: self.transformer(inputs_embeds=...) -> attention mask defaults to ones.
        attention_mask = jnp.ones((B, S), dtype=jnp.float32)

    # Block-diagonal (batch-flattened) + key-padding additive mask, built once on host.
    mask_flat = attention_mask.reshape(N).astype(jnp.float32)
    batch_of = jnp.arange(N, dtype=jnp.int32) // S
    allowed = (batch_of[:, None] == batch_of[None, :]) & (mask_flat[None, :] > 0.5)
    bias = jnp.where(allowed, 0.0, -1e9).astype(jnp.float32)     # (N, N)

    return _run_encoder_stack(params, x, bias, B, S, H, N, num_heads)


# ----------------------------------------------------------------------------
# Pure-JAX reference (f32, or mirroring the kernel's bf16 matmul inputs) + init
# ----------------------------------------------------------------------------
def _ref_forward(params, input_ids=None, attention_mask=None, inputs_embeds=None,
                 num_heads=4, matmul_dtype=jnp.float32):
    c = lambda a: a.astype(matmul_dtype)
    if inputs_embeds is not None:
        x = inputs_embeds.astype(jnp.float32)
        B, S, H = x.shape
        mask = jnp.ones((B, S), jnp.float32)
    else:
        B, S = input_ids.shape
        x = params["word_emb"][input_ids]
        H = x.shape[-1]
        mask = attention_mask.astype(jnp.float32)
    x = x + params["pos_emb"][:S][None] + params["type_emb"][0][None, None]
    x = _layer_norm(x, params["emb_ln_g"], params["emb_ln_b"])

    hd = H // num_heads
    scale = float(hd) ** -0.5
    bias = (mask - 1.0)[:, None, None, :] * 1e9          # (B,1,1,S)
    for lp in params["layers"]:
        qkv = jnp.einsum("bsh,hf->bsf", c(x), c(lp["wqkv"]),
                         preferred_element_type=jnp.float32) + lp["bqkv"]
        q, k, v = qkv[..., :H], qkv[..., H:2 * H], qkv[..., 2 * H:]
        qh = q.reshape(B, S, num_heads, hd)
        kh = k.reshape(B, S, num_heads, hd)
        vh = v.reshape(B, S, num_heads, hd)
        s = jnp.einsum("bqnd,bknd->bnqk", c(qh), c(kh),
                       preferred_element_type=jnp.float32) * scale + bias
        m = jnp.max(s, axis=-1, keepdims=True)
        p = jnp.exp(s - m)
        p = p / jnp.sum(p, axis=-1, keepdims=True)
        ctx = jnp.einsum("bnqk,bknd->bqnd", c(p), c(vh),
                         preferred_element_type=jnp.float32).reshape(B, S, H)
        attn = jnp.einsum("bsh,ho->bso", c(ctx), c(lp["wo"]),
                          preferred_element_type=jnp.float32) + lp["bo"]
        x1 = _layer_norm(x + attn, lp["ln1_g"], lp["ln1_b"])
        h1 = jnp.einsum("bsh,hi->bsi", c(x1), c(lp["w1"]),
                        preferred_element_type=jnp.float32) + lp["b1"]
        h1 = jax.nn.gelu(h1, approximate=True)
        ffn = jnp.einsum("bsi,ih->bsh", c(h1), c(lp["w2"]),
                         preferred_element_type=jnp.float32) + lp["b2"]
        x = _layer_norm(x1 + ffn, lp["ln2_g"], lp["ln2_b"])
    pooled = jnp.tanh(jnp.einsum("bh,ho->bo", c(x[:, 0, :]), c(params["wp"]),
                                 preferred_element_type=jnp.float32) + params["bp"])
    return x, pooled


def _init_params(key, vocab, max_pos, H, I, num_layers):
    state = {"key": key}

    def w(shape, scale=0.1):
        state["key"], sub = jax.random.split(state["key"])
        return scale * jax.random.normal(sub, shape, dtype=jnp.float32)

    params = {
        "word_emb": w((vocab, H)),
        "pos_emb": w((max_pos, H)),
        "type_emb": w((2, H)),
        "emb_ln_g": 1.0 + w((1, H)),
        "emb_ln_b": w((1, H)),
        "wp": w((H, H)),
        "bp": w((1, H)),
        "layers": [],
    }
    for _ in range(num_layers):
        params["layers"].append({
            "wqkv": w((H, 3 * H)), "bqkv": w((1, 3 * H)),
            "wo": w((H, H)), "bo": w((1, H)),
            "ln1_g": 1.0 + w((1, H)), "ln1_b": w((1, H)),
            "w1": w((H, I)), "b1": w((1, I)),
            "w2": w((I, H)), "b2": w((1, H)),
            "ln2_g": 1.0 + w((1, H)), "ln2_b": w((1, H)),
        })
    return params


if __name__ == "__main__":
    # TinyBERT-style config, scaled down: hidden=32, heads=4, ffn=64, layers=2,
    # vocab (after resize_token_embeddings) = 64, max positions = 16, batch=2, seq=8.
    B, S, H, NUM_HEADS, I, L = 2, 8, 32, 4, 64, 2
    VOCAB, MAX_POS = 64, 16

    key = jax.random.PRNGKey(0)
    k_params, k_ids, k_emb = jax.random.split(key, 3)
    params = _init_params(k_params, VOCAB, MAX_POS, H, I, L)

    input_ids = jax.random.randint(k_ids, (B, S), 0, VOCAB, dtype=jnp.int32)
    attention_mask = jnp.array([[1, 1, 1, 1, 1, 1, 1, 1],
                                [1, 1, 1, 1, 1, 1, 0, 0]], dtype=jnp.int32)

    # --- (input_ids, attention_mask) path ---
    hidden, pooled = base_encoder_forward(params, input_ids=input_ids,
                                          attention_mask=attention_mask,
                                          num_heads=NUM_HEADS)
    hidden = jax.block_until_ready(hidden)
    pooled = jax.block_until_ready(pooled)
    assert hidden.shape == (B, S, H) and pooled.shape == (B, H)

    # Tight check vs a reference mirroring the kernel's bf16 MXU inputs.
    rh_bf, rp_bf = _ref_forward(params, input_ids=input_ids,
                                attention_mask=attention_mask,
                                num_heads=NUM_HEADS, matmul_dtype=jnp.bfloat16)
    assert jnp.allclose(hidden, rh_bf, atol=1e-2, rtol=1e-2)
    assert jnp.allclose(pooled, rp_bf, atol=1e-2, rtol=1e-2)
    # Looser sanity check vs the pure-f32 reference (kernel uses bf16 matmul inputs
    # and an approximate EUP reciprocal, so small drift from f32 is expected).
    rh_f, rp_f = _ref_forward(params, input_ids=input_ids,
                              attention_mask=attention_mask,
                              num_heads=NUM_HEADS, matmul_dtype=jnp.float32)
    assert jnp.allclose(hidden, rh_f, atol=5e-2, rtol=5e-2)
    assert jnp.allclose(pooled, rp_f, atol=5e-2, rtol=5e-2)

    # --- inputs_embeds path (mask defaults to all ones, as in BaseEncoder.forward) ---
    inputs_embeds = 0.5 * jax.random.normal(k_emb, (B, S, H), dtype=jnp.float32)
    hidden2, pooled2 = base_encoder_forward(params, inputs_embeds=inputs_embeds,
                                            num_heads=NUM_HEADS)
    hidden2 = jax.block_until_ready(hidden2)
    pooled2 = jax.block_until_ready(pooled2)
    rh2, rp2 = _ref_forward(params, inputs_embeds=inputs_embeds,
                            num_heads=NUM_HEADS, matmul_dtype=jnp.bfloat16)
    assert jnp.allclose(hidden2, rh2, atol=1e-2, rtol=1e-2)
    assert jnp.allclose(pooled2, rp2, atol=1e-2, rtol=1e-2)
    rh2f, rp2f = _ref_forward(params, inputs_embeds=inputs_embeds,
                              num_heads=NUM_HEADS, matmul_dtype=jnp.float32)
    assert jnp.allclose(hidden2, rh2f, atol=5e-2, rtol=5e-2)
    assert jnp.allclose(pooled2, rp2f, atol=5e-2, rtol=5e-2)

    print("KERNEL_OK")
</pallas_src>

<mosaic_0001>
module attributes {stable_mosaic.version = 11 : i64} {
  func.func @_embed_ids_kernel(%arg0: memref<16x1xi32, #tpu.memory_space<vmem>>, %arg1: memref<64x32xf32, #tpu.memory_space<vmem>>, %arg2: memref<16x32xf32, #tpu.memory_space<vmem>>, %arg3: memref<1x32xf32, #tpu.memory_space<vmem>>, %arg4: memref<1x32xf32, #tpu.memory_space<vmem>>, %arg5: memref<16x32xf32, #tpu.memory_space<vmem>>) attributes {dimension_semantics = [], scalar_prefetch = 0 : i64, scratch_operands = 0 : i64, tpu.core_type = #tpu.core_type<tc>} {
    %0 = tpu.iota {dimensions = array<i32: 1>} : vector<16x64xi32>
    %c0 = arith.constant 0 : index
    %c0_0 = arith.constant 0 : index
    %1 = vector.load %arg0[%c0, %c0_0] : memref<16x1xi32, #tpu.memory_space<vmem>>, vector<16x1xi32>
    %2 = vector.broadcast %1 : vector<16x1xi32> to vector<16x64xi32>
    %3 = arith.cmpi eq, %0, %2 : vector<16x64xi32>
    %4 = arith.extui %3 : vector<16x64xi1> to vector<16x64xi32>
    %5 = arith.sitofp %4 : vector<16x64xi32> to vector<16x64xf32>
    %c0_1 = arith.constant 0 : index
    %c0_2 = arith.constant 0 : index
    %6 = vector.load %arg1[%c0_1, %c0_2] : memref<64x32xf32, #tpu.memory_space<vmem>>, vector<64x32xf32>
    %cst = arith.constant dense<0.000000e+00> : vector<16x32xf32>
    %7 = tpu.matmul %5, %6, %cst {dimension_numbers = #tpu.dot_dimension_numbers<[1], [0], [0], [1], [0, 0, 1, 1], [], []>} : vector<16x64xf32>, vector<64x32xf32>, vector<16x32xf32> -> vector<16x32xf32>
    %c0_3 = arith.constant 0 : index
    %c0_4 = arith.constant 0 : index
    %8 = vector.load %arg2[%c0_3, %c0_4] : memref<16x32xf32, #tpu.memory_space<vmem>>, vector<16x32xf32>
    %9 = arith.addf %7, %8 : vector<16x32xf32>
    %c0_5 = arith.constant 0 : index
    %c0_6 = arith.constant 0 : index
    %10 = vector.load %arg3[%c0_5, %c0_6] : memref<1x32xf32, #tpu.memory_space<vmem>>, vector<1x32xf32>
    %c0_7 = arith.constant 0 : index
    %c0_8 = arith.constant 0 : index
    %11 = vector.load %arg4[%c0_7, %c0_8] : memref<1x32xf32, #tpu.memory_space<vmem>>, vector<1x32xf32>
    %cst_9 = arith.constant dense<0.000000e+00> : vector<16xf32>
    %12 = vector.multi_reduction <add>, %9, %cst_9 [1] : vector<16x32xf32> to vector<16xf32>
    %13 = vector.shape_cast %12 : vector<16xf32> to vector<16x1xf32>
    %cst_10 = arith.constant 3.200000e+01 : f32
    %14 = vector.broadcast %cst_10 : f32 to vector<16x1xf32>
    %15 = arith.divf %13, %14 : vector<16x1xf32>
    %16 = vector.broadcast %15 : vector<16x1xf32> to vector<16x32xf32>
    %17 = arith.subf %9, %16 : vector<16x32xf32>
    %18 = arith.mulf %17, %17 : vector<16x32xf32>
    %cst_11 = arith.constant dense<0.000000e+00> : vector<16xf32>
    %19 = vector.multi_reduction <add>, %18, %cst_11 [1] : vector<16x32xf32> to vector<16xf32>
    %20 = vector.shape_cast %19 : vector<16xf32> to vector<16x1xf32>
    %cst_12 = arith.constant 3.200000e+01 : f32
    %21 = vector.broadcast %cst_12 : f32 to vector<16x1xf32>
    %22 = arith.divf %20, %21 : vector<16x1xf32>
    %23 = vector.broadcast %15 : vector<16x1xf32> to vector<16x32xf32>
    %24 = arith.subf %9, %23 : vector<16x32xf32>
    %cst_13 = arith.constant 9.99999996E-13 : f32
    %25 = vector.broadcast %cst_13 : f32 to vector<16x1xf32>
    %26 = arith.addf %22, %25 : vector<16x1xf32>
    %27 = math.rsqrt %26 : vector<16x1xf32>
    %28 = vector.broadcast %27 : vector<16x1xf32> to vector<16x32xf32>
    %29 = arith.mulf %24, %28 : vector<16x32xf32>
    %30 = vector.broadcast %10 : vector<1x32xf32> to vector<16x32xf32>
    %31 = arith.mulf %29, %30 : vector<16x32xf32>
    %32 = vector.broadcast %11 : vector<1x32xf32> to vector<16x32xf32>
    %33 = arith.addf %31, %32 : vector<16x32xf32>
    %c0_14 = arith.constant 0 : index
    %c0_15 = arith.constant 0 : index
    %34 = vector.load %arg5[%c0_14, %c0_15] : memref<16x32xf32, #tpu.memory_space<vmem>>, vector<16x32xf32>
    tpu.vector_store %arg5[%c0_14, %c0_15], %33 {strides = array<i32>} : memref<16x32xf32, #tpu.memory_space<vmem>>, vector<16x32xf32>,
    return
  }
}

</mosaic_0001>

<bundles_post_ra>
// kernel: tpu_custom_call.1
= control target key start
LH: loop header
LB: loop body
LE: loop exit
PB: predicated region body
PF: predicated region fallthrough
CT: control target
= control target key end

     0   :  { %v214_v2 = vmov 0   ;;  %s301_s0 = inlined_call_operand.vmem [shape: s32[16,1], index: 0, kind: input, shape index: {}]   ;;  %s302_s1 = inlined_call_operand.vmem [shape: f32[64,32], index: 1, kind: input, shape index: {}]   ;;  %s303_s2 = inlined_call_operand.vmem [shape: f32[16,32], index: 2, kind: input, shape index: {}]   ;;  %s304_s3 = inlined_call_operand.vmem [shape: f32[1,32], index: 3, kind: input, shape index: {}]   ;;  %s305_s4 = inlined_call_operand.vmem [shape: f32[1,32], index: 4, kind: input, shape index: {}]   ;;  %s306_s5 = inlined_call_operand.hbm [shape: f32[16,32], index: 5, kind: output, shape index: {}]  }
   0x1   :  { %v23_v0 = vld [vmem:[%s301_s0] sm:$0xff]  ;;  %v44_v1 = vld [vmem:[%s302_s1 + $0x38] sm:$0xff]  ;;  %179 = vset.pattern.permute.xlu0 %v214_v2  ;;  %v43_v3 = vld [vmem:[%s302_s1 + $0x30] sm:$0xff] }
   0x2   :  { %62 = vmatpush.msra.mxu0 %v44_v1  ;;  %26 = vperm.xlu0 %179, %v23_v0   ;;  %v42_v4 = vld [vmem:[%s302_s1 + $0x28] sm:$0xff] }
   0x3   :  { %165 = vmatpush.msra.mxu1 %v44_v1 }
   0x4   :  { %63 = vmatpush.msra.mxu0 %v43_v3 }
   0x5   :  { %10 = vsyncpa [#allocation3], 0  ;;  %v41_v5 = vld [vmem:[%s302_s1 + $0x20] sm:$0xff]  ;;  %166 = vmatpush.msra.mxu1 %v43_v3  ;;  %v40_v6 = vld [vmem:[%s302_s1 + $0x18] sm:$0xff]  ;;  %v21_v11 = vlaneseq  ;;  %vm47_vm0 = vcmask 523264   ;;  %v215_v14 = vmov 0.0  }
   0x6   :  { %64 = vmatpush.msra.mxu0 %v42_v4  ;;  %v24_v7 = vld [vmem:[%s301_s0 + $0x8] sm:$0xff]  ;;  %v39_v8 = vld [vmem:[%s302_s1 + $0x10] sm:$0xff]  ;;  %v37_v10 = vld [vmem:[%s302_s1] sm:$0xff]  ;;  %vm79_vm3 = vcmask 261120   ;;  %v216_v26 = vmov 32.0   ;;  %s149_s21 = sshll.u32 %s306_s5, 4  ;;  %s150_s21 = int_to_ptr.hbm [resolvable:$true] %s149_s21 }
   0x7   :  { %167 = vmatpush.msra.mxu1 %v42_v4  ;;  %v38_v9 = vld [vmem:[%s302_s1 + $0x8] sm:$0xff]  ;;  %v22_v12 = vand.u32 127, %v21_v11  ;;  %v45_v18 = vld [vmem:[%s303_s2] sm:$0xff]  ;;  %182 = vrcp.f32 %v216_v26  ;;  %s219_s22 = smov 8  }
   0x8   :  { %65 = vmatpush.msra.mxu0 %v41_v5  ;;  %v46_v22 = vld [vmem:[%s303_s2 + $0x8] sm:$0xff]  ;;  %v180_v57 = vld [vmem:[%s304_s3] ss:$0 sm:$0xff]  ;;  %s217_s3 = smov [#allocation2]  }
   0x9   :  { %168 = vmatpush.msra.mxu1 %v41_v5  ;;  %v181_v61 = vld [vmem:[%s305_s4] ss:$0 sm:$0xff]  ;;  %s147_s18 = sshll.u32 %s217_s3, 4  ;;  %s218_s4 = smov 128   ;;  %s148_s18 = int_to_ptr.vmem [resolvable:$true] %s147_s18 }
   0xa   :  { %66 = vmatpush.msra.mxu0 %v40_v6  ;;  %29 = vperm.xlu0 %179, %v24_v7  }
   0xb   :  { %169 = vmatpush.msra.mxu1 %v40_v6 }
   0xc   :  { %67 = vmatpush.msra.mxu0 %v39_v8 }
   0xd   :  { %170 = vmatpush.msra.mxu1 %v39_v8  ;;  %v183_v27 = vpop.eup %182 }
   0xe   :  { %68 = vmatpush.msra.mxu0 %v38_v9  ;;  %v87_v28 = vmul.f32 32.0, %v183_v27  ;;  %vm91_vm4 = vweird.f32 %v183_v27 }
   0xf   :  { %171 = vmatpush.msra.mxu1 %v38_v9 }
  0x10   :  { %69 = vmatpush.msra.mxu0 %v37_v10  ;;  %v88_v29 = vsub.f32 1.0, %v87_v28 }
  0x11   :  { %172 = vmatpush.msra.mxu1 %v37_v10 }
  0x12   :  { %v89_v30 = vmul.f32 %v183_v27, %v88_v29 }
  0x14   :  { %v90_v31 = vadd.f32 %v183_v27, %v89_v30 }
  0x16   :  { %v92_v32 = vsel %vm91_vm4, %v183_v27, %v90_v31 }
  0x74   :  { %v27_v13 = vpop.permute.xlu0 %26 }
  0x75   :  { %vm31_vm1 = vcmp.eq.s32.totalorder %v22_v12, %v27_v13 }
  0x76   :  { %v161_v15 = vsel %vm31_vm1, 1.0, %v215_v14 }
  0x77   :  { %163 = vmatmul.msk.f32.vlgmr.msra.gmra.mxu0 %vm47_vm0, %v161_v15 }
  0x7c   :  { %v30_v16 = vpop.permute.xlu0 %29 }
  0x7d   :  { %vm32_vm2 = vcmp.eq.s32.totalorder %v22_v12, %v30_v16 }
  0x7e   :  { %v162_v17 = vsel %vm32_vm2, 1.0, %v215_v14 }
  0x7f   :  { %164 = vmatmul.msk.f32.vlgmr.msra.gmra.mxu1 %vm47_vm0, %v162_v17 }
  0xf4   :  { %v71_v19 = vpop.f32.mrf.mxu0 }
  0xf5   :  { %v72_v20 = vadd.f32 %v71_v19, %v45_v18 }
  0xf7   :  { %v80_v21 = vsel %vm79_vm3, %v72_v20, 0.0 }
  0xf8   :  { %81 = vadd.xlane.f32.xlu1 %v80_v21 }
  0xfc   :  { %v74_v23 = vpop.f32.mrf.mxu1 }
  0xfd   :  { %v75_v24 = vadd.f32 %v74_v23, %v46_v22 }
  0xff   :  { %v83_v25 = vsel %vm79_vm3, %v75_v24, 0.0 }
 0x100   :  { %84 = vadd.xlane.f32.xlu1 %v83_v25 }
 0x16b   :  { %v82_v33 = vpop.xlane.xlu1 %81 }
 0x16c   :  { %v93_v34 = vmul.f32 %v92_v32, %v82_v33 }
 0x16e   :  { %v95_v35 = vsub.f32 %v72_v20, %v93_v34 }
 0x170   :  { %v97_v36 = vmul.f32 %v95_v35, %v95_v35 }
 0x172   :  { %v99_v37 = vsel %vm79_vm3, %v97_v36, 0.0 }
 0x173   :  { %100 = vadd.xlane.f32.xlu2 %v99_v37  ;;  %v85_v38 = vpop.xlane.xlu1 %84 }
 0x174   :  { %v94_v39 = vmul.f32 %v92_v32, %v85_v38 }
 0x176   :  { %v96_v40 = vsub.f32 %v75_v24, %v94_v39 }
 0x178   :  { %v98_v41 = vmul.f32 %v96_v40, %v96_v40 }
 0x17a   :  { %v102_v42 = vsel %vm79_vm3, %v98_v41, 0.0 }
 0x17b   :  { %103 = vadd.xlane.f32.xlu2 %v102_v42 }
 0x1e6   :  { %v101_v43 = vpop.xlane.xlu2 %100 }
 0x1e7   :  { %v105_v44 = vmul.f32 %v101_v43, %v92_v32 }
 0x1e9   :  { %v107_v45 = vadd.f32 1e-12, %v105_v44 }
 0x1eb   :  { %184 = vrsqrt.f32 %v107_v45  ;;  %vm115_vm6 = vweird.f32 %v107_v45 }
 0x1ee   :  { %v104_v46 = vpop.xlane.xlu2 %103 }
 0x1ef   :  { %v106_v47 = vmul.f32 %v104_v46, %v92_v32 }
 0x1f1   :  { %v185_v48 = vpop.eup %184  ;;  %v108_v49 = vadd.f32 1e-12, %v106_v47 }
 0x1f2   :  { %v110_v50 = vmul.f32 %v185_v48, %v107_v45  ;;  %vm116_vm5 = vweird.f32 %v185_v48 }
 0x1f3   :  { %186 = vrsqrt.f32 %v108_v49  ;;  %vm117_vm7 = vmor %vm115_vm6, %vm116_vm5  ;;  %vm125_vm9 = vweird.f32 %v108_v49 }
 0x1f4   :  { %v111_v51 = vmul.f32 %v185_v48, %v110_v50 }
 0x1f6   :  { %v112_v52 = vmul.f32 0.5, %v111_v51 }
 0x1f8   :  { %v113_v53 = vsub.f32 1.5, %v112_v52 }
 0x1f9   :  { %v187_v54 = vpop.eup %186 }
 0x1fa   :  { %v114_v55 = vmul.f32 %v185_v48, %v113_v53  ;;  %v120_v56 = vmul.f32 %v187_v54, %v108_v49  ;;  %vm126_vm8 = vweird.f32 %v187_v54 }
 0x1fb   :  { %vm127_vm10 = vmor %vm125_vm9, %vm126_vm8 }
 0x1fc   :  { %v118_v58 = vsel %vm117_vm7, %v185_v48, %v114_v55  ;;  %v121_v59 = vmul.f32 %v187_v54, %v120_v56 }
 0x1fd   :  { %v129_v60 = vmul.f32 %v118_v58, %v95_v35 }
 0x1fe   :  { %v122_v62 = vmul.f32 0.5, %v121_v59 }
 0x1ff   :  { %v134_v63 = vmul.f32 %v180_v57, %v129_v60 }
 0x200   :  { %v123_v0 = vsub.f32 1.5, %v122_v62 }
 0x201   :  { %v139_v1 = vadd.f32 %v181_v61, %v134_v63 }
 0x202   :  { %v124_v2 = vmul.f32 %v187_v54, %v123_v0 }
 0x203   :  { %141 = vst.msk [vmem:[#allocation2] sm:$0xff] %vm79_vm3, %v139_v1 }
 0x204   :  { %v128_v3 = vsel %vm127_vm10, %v187_v54, %v124_v2 }
 0x205   :  { %v130_v4 = vmul.f32 %v128_v3, %v96_v40 }
 0x207   :  { %v135_v5 = vmul.f32 %v180_v57, %v130_v4 }
 0x209   :  { %v140_v6 = vadd.f32 %v181_v61, %v135_v5 }
 0x20b   :  { %142 = vst.msk [vmem:[#allocation2 + $0x8] sm:$0xff] %vm79_vm3, %v140_v6 }
 0x20c   :  { %155 = dma.vmem_to_hbm [thread:$0]  %s148_s18, 256, %s150_s21, [#allocation3], %s218_s4, %s218_s4, %s219_s22  }
 0x20d   :  { %212 = dma.done.wait [#allocation3], 256  }
 0x20e   :  { %213 = vsyncadd [#allocation3], 4294967040 }
 0x20f   :  { %160 = vsyncpa [#allocation3], 1 }

</bundles_post_ra>
